<compile_context>
chip_gen: v6e
topology: v6e:2x2x1
jax: 0.10.0
libtpu: 0.0.40
codegen_flags: <defaults>
</compile_context>

<pallas_src>
import functools
import math

import jax
import jax.numpy as jnp
from jax.experimental import pallas as pl
from jax.experimental.pallas import tpu as pltpu


# --------------------------------------------------------------------------
# Pallas kernel: one TransformerEncoderLayer (post-norm, ReLU, eval mode)
# --------------------------------------------------------------------------
def _ln(x, g, b, eps=1e-5):
    mu = jnp.mean(x, axis=-1, keepdims=True)
    xc = x - mu
    var = jnp.mean(xc * xc, axis=-1, keepdims=True)
    return xc * jax.lax.rsqrt(var + eps) * g + b


def _encoder_layer_kernel(num_heads, seq_len,
                          x_ref, w_qkv_ref, b_qkv_ref, w_oh_ref, b_o_ref,
                          ln1_g_ref, ln1_b_ref, w1_ref, b1_ref, w2_ref, b2_ref,
                          ln2_g_ref, ln2_b_ref, o_ref):
    R, C = x_ref.shape                  # block: (seq_tile*S, d_model) 2D slab
    S = seq_len
    nb = R // S                         # sequences in this block
    Dh = C // num_heads
    scale = 1.0 / float(Dh) ** 0.5

    x = x_ref[...].astype(jnp.float32)              # (R, C) f32
    xb = x.astype(jnp.bfloat16)                     # bf16 MXU operand

    # ---- fused QKV projection (bf16 x bf16 -> f32 accumulate on the MXU) ----
    qkv = jnp.dot(xb, w_qkv_ref[...], preferred_element_type=jnp.float32)
    qkv = qkv + b_qkv_ref[...]
    qkv3 = qkv.reshape(nb, S, 3 * C)                # leading-dim split only

    # ---- multi-head self-attention ----
    # Heads are unrolled statically; per-head output projection is accumulated
    # (W_o stored as (nh, Dh, C)) so no lane-axis concatenate is needed and
    # only one head's context is live at a time.
    attn = jnp.zeros((R, C), jnp.float32)
    for h in range(num_heads):
        q_h = qkv3[:, :, h * Dh:(h + 1) * Dh]
        k_h = qkv3[:, :, C + h * Dh:C + (h + 1) * Dh]
        v_h = qkv3[:, :, 2 * C + h * Dh:2 * C + (h + 1) * Dh]
        qb = (q_h * scale).astype(jnp.bfloat16)
        kb = k_h.astype(jnp.bfloat16)
        s = jnp.einsum('bqd,bkd->bqk', qb, kb,
                       preferred_element_type=jnp.float32)
        s = s - jnp.max(s, axis=-1, keepdims=True)
        p = jnp.exp(s)
        # reciprocal on the EUP slot instead of a VPU divide
        p = p * pl.reciprocal(jnp.sum(p, axis=-1, keepdims=True), approx=True)
        ctx = jnp.einsum('bqk,bkd->bqd', p.astype(jnp.bfloat16),
                         v_h.astype(jnp.bfloat16),
                         preferred_element_type=jnp.float32)
        attn = attn + jnp.dot(ctx.reshape(R, Dh).astype(jnp.bfloat16),
                              w_oh_ref[h], preferred_element_type=jnp.float32)
    attn = attn + b_o_ref[...]
    # TODO(synk): dropout(p=0.1) skipped -- identity at inference.

    h1 = _ln(x + attn, ln1_g_ref[...], ln1_b_ref[...])

    # ---- feed-forward: Linear -> ReLU -> Linear (bf16 operands, f32 acc) ----
    f = jnp.dot(h1.astype(jnp.bfloat16), w1_ref[...],
                preferred_element_type=jnp.float32) + b1_ref[...]
    f = jnp.maximum(f, 0.0)
    f = jnp.dot(f.astype(jnp.bfloat16), w2_ref[...],
                preferred_element_type=jnp.float32) + b2_ref[...]

    h2 = _ln(h1 + f, ln2_g_ref[...], ln2_b_ref[...])
    o_ref[...] = h2.astype(o_ref.dtype)


def _vmem_capacity_bytes():
    try:
        return int(pltpu.get_tpu_info().vmem_capacity_bytes)
    except Exception:
        return 64 << 20   # conservative (v7x per-core) fallback


def _encoder_layer(x_rows, p, num_heads, seq_len, *, seq_tile=None):
    """x_rows: [N*S, C] flattened tokens (N = B*T sequences of S = H*W tokens)."""
    R_total, C = x_rows.shape
    S = seq_len
    N = R_total // S
    Dff = p["w1"].shape[1]
    assert C % num_heads == 0, (C, num_heads)
    Dh = C // num_heads

    # ---- generation-aware VMEM budget (3/4 of per-core capacity, <=96MiB) ----
    budget_cap = min(max((_vmem_capacity_bytes() * 3) // 4, 32 << 20), 96 << 20)

    # Weights resident in VMEM (double-buffered by the pipeline): bf16 matrices,
    # f32 biases / LN params.
    weight_bytes = (2 * (C * 3 * C + num_heads * Dh * C + C * Dff + Dff * C)
                    + 4 * (3 * C + C + Dff + 5 * C))
    # Per-token live f32 bytes: in/out blocks (double-buffered) + qkv (3C) +
    # attn/h1 accumulators + FFN activation (Dff) + per-head scores (~S) +
    # bf16 shadow copies; generous slack for compiler temporaries.
    row_bytes = 4 * (10 * C + 2 * Dff + 3 * S + Dh)

    if seq_tile is None:
        usable = max(budget_cap - 2 * weight_bytes - (8 << 20), row_bytes * S)
        max_tile = max(1, usable // (row_bytes * S))
        seq_tile = min(max_tile, max(1, 2048 // max(S, 1)))   # ~2048 rows/block
        if N >= 4:
            seq_tile = min(seq_tile, max(1, N // 4))   # >=4 steps: 2 per TC on v7x
        elif N >= 2:
            seq_tile = min(seq_tile, max(1, N // 2))
    seq_tile = max(1, min(int(seq_tile), max(N, 1)))
    # (8,128) rule on the 2D slab: the row-block (seq_tile*S) must be 8-aligned.
    align = 8 // math.gcd(S, 8)
    seq_tile = max(align, (seq_tile // align) * align)

    n_pad = pl.cdiv(N, seq_tile) * seq_tile
    if n_pad != N:
        # Padded rows are zeros; LN on them is finite (var=0 -> rsqrt(eps)) and
        # they are sliced off below.
        x_rows = jnp.pad(x_rows, ((0, (n_pad - N) * S), (0, 0)))
    grid = (n_pad // seq_tile,)
    rows_tile = seq_tile * S

    vmem_budget = int(min(max(2 * weight_bytes + rows_tile * row_bytes + (8 << 20),
                              16 << 20),
                          budget_cap))

    flops = 2 * n_pad * S * C * (4 * C + 2 * Dff) + 4 * n_pad * S * S * C
    cost = pl.CostEstimate(
        flops=int(flops),
        transcendentals=int(n_pad * num_heads * S * S),
        bytes_accessed=int(2 * 4 * n_pad * S * C + weight_bytes),
    )

    # bf16 weights for the MXU; biases / LN params stay f32.
    bf16 = jnp.bfloat16
    w_qkv = p["w_qkv"].astype(bf16)
    w_oh = p["w_o"].reshape(num_heads, Dh, C).astype(bf16)   # per-head out-proj
    w1 = p["w1"].astype(bf16)
    w2 = p["w2"].astype(bf16)

    out = pl.pallas_call(
        functools.partial(_encoder_layer_kernel, num_heads, S),
        out_shape=jax.ShapeDtypeStruct((n_pad * S, C), x_rows.dtype),
        grid_spec=pltpu.PrefetchScalarGridSpec(
            num_scalar_prefetch=0,
            grid=grid,
            in_specs=[
                pl.BlockSpec((rows_tile, C), lambda i: (i, 0)),          # x slab
                pl.BlockSpec((C, 3 * C), lambda i: (0, 0)),              # W_qkv
                pl.BlockSpec((1, 3 * C), lambda i: (0, 0)),              # b_qkv
                pl.BlockSpec((num_heads, Dh, C), lambda i: (0, 0, 0)),   # W_out/head
                pl.BlockSpec((1, C),     lambda i: (0, 0)),              # b_out
                pl.BlockSpec((1, C),     lambda i: (0, 0)),              # ln1 gamma
                pl.BlockSpec((1, C),     lambda i: (0, 0)),              # ln1 beta
                pl.BlockSpec((C, Dff),   lambda i: (0, 0)),              # W1
                pl.BlockSpec((1, Dff),   lambda i: (0, 0)),              # b1
                pl.BlockSpec((Dff, C),   lambda i: (0, 0)),              # W2
                pl.BlockSpec((1, C),     lambda i: (0, 0)),              # b2
                pl.BlockSpec((1, C),     lambda i: (0, 0)),              # ln2 gamma
                pl.BlockSpec((1, C),     lambda i: (0, 0)),              # ln2 beta
            ],
            out_specs=pl.BlockSpec((rows_tile, C), lambda i: (i, 0)),
        ),
        compiler_params=pltpu.CompilerParams(
            dimension_semantics=("parallel",),
            vmem_limit_bytes=vmem_budget,
        ),
        cost_estimate=cost,
    )(x_rows, w_qkv, p["b_qkv"], w_oh, p["b_o"],
      p["ln1_g"], p["ln1_b"], w1, p["b1"], w2, p["b2"],
      p["ln2_g"], p["ln2_b"])

    return out[: N * S]


def spatial_transformer(x, layer_params, num_heads, *, seq_tile=None):
    """x: [B, C, T, H, W]; layer_params: list of per-layer weight dicts."""
    B, C, T, H, W = x.shape
    S = H * W
    # Permute(0,2,3,4,1) + Flatten(2,3) + Flatten(0,1): pure layout, left to XLA.
    h = jnp.transpose(x, (0, 2, 3, 4, 1)).reshape(B * T * S, C)
    # NOTE: for very small/latency-bound shapes, fusing all layers into one
    # pallas_call (layer index as an outer 'arbitrary' grid axis with aliased
    # activations) would remove (num_layers-1) HBM round trips.
    for p in layer_params:
        h = _encoder_layer(h, p, num_heads, S, seq_tile=seq_tile)
    # Unflatten(1,(H,W)) + Unflatten(0,(B,T)) + Permute(0,4,1,2,3).
    return jnp.transpose(h.reshape(B, T, H, W, C), (0, 4, 1, 2, 3))


# --------------------------------------------------------------------------
# Pure-JAX f32 reference (same math as PyTorch eval-mode TransformerEncoder)
# --------------------------------------------------------------------------
def _layer_norm_ref(x, g, b, eps=1e-5):
    mu = x.mean(-1, keepdims=True)
    var = ((x - mu) ** 2).mean(-1, keepdims=True)
    return (x - mu) * jax.lax.rsqrt(var + eps) * g + b


def _encoder_layer_ref(x, p, num_heads):
    N, S, C = x.shape
    Dh = C // num_heads
    qkv = x @ p["w_qkv"] + p["b_qkv"]
    q, k, v = jnp.split(qkv, 3, axis=-1)

    def heads(t):
        return t.reshape(N, S, num_heads, Dh).transpose(0, 2, 1, 3)

    q, k, v = heads(q), heads(k), heads(v)
    s = jnp.einsum('nhqd,nhkd->nhqk', q, k) / (Dh ** 0.5)
    a = jax.nn.softmax(s, axis=-1)
    ctx = jnp.einsum('nhqk,nhkd->nhqd', a, v).transpose(0, 2, 1, 3).reshape(N, S, C)
    attn = ctx @ p["w_o"] + p["b_o"]
    h1 = _layer_norm_ref(x + attn, p["ln1_g"], p["ln1_b"])
    f = jnp.maximum(h1 @ p["w1"] + p["b1"], 0.0) @ p["w2"] + p["b2"]
    return _layer_norm_ref(h1 + f, p["ln2_g"], p["ln2_b"])


def spatial_transformer_ref(x, layer_params, num_heads):
    B, C, T, H, W = x.shape
    h = jnp.transpose(x, (0, 2, 3, 4, 1)).reshape(B * T, H * W, C)
    for p in layer_params:
        h = _encoder_layer_ref(h, p, num_heads)
    return jnp.transpose(h.reshape(B, T, H, W, C), (0, 4, 1, 2, 3))


# --------------------------------------------------------------------------
if __name__ == "__main__":
    key = jax.random.PRNGKey(0)

    # Small shapes consistent with the module:
    #   input [B, C=d_model, T, H, W]; unflatten1=(H, W); unflatten0=(B, T)
    B, T, H, W = 2, 2, 4, 4
    d_model, num_heads, num_layers = 32, 4, 2
    d_ff = num_heads * 64                      # dim_feedforward = nhead * 64

    keys = jax.random.split(key, 1 + num_layers)
    x = jax.random.normal(keys[0], (B, d_model, T, H, W), dtype=jnp.float32)

    def init_layer(k):
        ks = jax.random.split(k, 12)
        C, F = d_model, d_ff
        s_in = 1.0 / (C ** 0.5)
        s_ff = 1.0 / (F ** 0.5)
        u = jax.random.uniform
        n = jax.random.normal
        return dict(
            # Weights stored pre-transposed (x @ W), same math as PyTorch x @ W.T
            w_qkv=u(ks[0], (C, 3 * C), minval=-s_in, maxval=s_in, dtype=jnp.float32),
            b_qkv=u(ks[1], (1, 3 * C), minval=-s_in, maxval=s_in, dtype=jnp.float32),
            w_o=u(ks[2], (C, C), minval=-s_in, maxval=s_in, dtype=jnp.float32),
            b_o=u(ks[3], (1, C), minval=-s_in, maxval=s_in, dtype=jnp.float32),
            ln1_g=1.0 + 0.1 * n(ks[4], (1, C), dtype=jnp.float32),
            ln1_b=0.1 * n(ks[5], (1, C), dtype=jnp.float32),
            w1=u(ks[6], (C, F), minval=-s_in, maxval=s_in, dtype=jnp.float32),
            b1=u(ks[7], (1, F), minval=-s_in, maxval=s_in, dtype=jnp.float32),
            w2=u(ks[8], (F, C), minval=-s_ff, maxval=s_ff, dtype=jnp.float32),
            b2=u(ks[9], (1, C), minval=-s_ff, maxval=s_ff, dtype=jnp.float32),
            ln2_g=1.0 + 0.1 * n(ks[10], (1, C), dtype=jnp.float32),
            ln2_b=0.1 * n(ks[11], (1, C), dtype=jnp.float32),
        )

    params = [init_layer(keys[1 + l]) for l in range(num_layers)]

    out = spatial_transformer(x, params, num_heads)
    out = jax.block_until_ready(out)
    assert out.shape == x.shape, out.shape

    with jax.default_matmul_precision("highest"):
        ref = jax.block_until_ready(spatial_transformer_ref(x, params, num_heads))

    # bf16 MXU operands (f32 accumulation) drift ~1e-2 vs the f32 reference;
    # tolerance loosened accordingly (outputs are LayerNorm'ed, O(1)).
    max_err = float(jnp.max(jnp.abs(out - ref)))
    assert jnp.allclose(out, ref, atol=1e-1, rtol=1e-1), \
        f"mismatch vs reference, max abs err={max_err}"

    print("KERNEL_OK")
</pallas_src>

<mosaic_0001>
module attributes {stable_mosaic.version = 11 : i64} {
  func.func @_encoder_layer_kernel(%arg0: i32, %arg1: memref<16x32xf32, #tpu.memory_space<vmem>>, %arg2: memref<32x96xbf16, #tpu.memory_space<vmem>>, %arg3: memref<1x96xf32, #tpu.memory_space<vmem>>, %arg4: memref<4x8x32xbf16, #tpu.memory_space<vmem>>, %arg5: memref<1x32xf32, #tpu.memory_space<vmem>>, %arg6: memref<1x32xf32, #tpu.memory_space<vmem>>, %arg7: memref<1x32xf32, #tpu.memory_space<vmem>>, %arg8: memref<32x256xbf16, #tpu.memory_space<vmem>>, %arg9: memref<1x256xf32, #tpu.memory_space<vmem>>, %arg10: memref<256x32xbf16, #tpu.memory_space<vmem>>, %arg11: memref<1x32xf32, #tpu.memory_space<vmem>>, %arg12: memref<1x32xf32, #tpu.memory_space<vmem>>, %arg13: memref<1x32xf32, #tpu.memory_space<vmem>>, %arg14: memref<16x32xf32, #tpu.memory_space<vmem>>) attributes {dimension_semantics = [#tpu.dimension_semantics<parallel>], iteration_bounds = array<i64: 4>, scalar_prefetch = 0 : i64, scratch_operands = 0 : i64, tpu.core_type = #tpu.core_type<tc>, window_params = [{transform_indices = @transform_0, window_bounds = array<i64: 16, 32>}, {pipeline_mode = #tpu.pipeline_mode<synchronous>, transform_indices = @transform_1, window_bounds = array<i64: 32, 96>}, {pipeline_mode = #tpu.pipeline_mode<synchronous>, transform_indices = @transform_2, window_bounds = array<i64: 1, 96>}, {pipeline_mode = #tpu.pipeline_mode<synchronous>, transform_indices = @transform_3, window_bounds = array<i64: 4, 8, 32>}, {pipeline_mode = #tpu.pipeline_mode<synchronous>, transform_indices = @transform_4, window_bounds = array<i64: 1, 32>}, {pipeline_mode = #tpu.pipeline_mode<synchronous>, transform_indices = @transform_5, window_bounds = array<i64: 1, 32>}, {pipeline_mode = #tpu.pipeline_mode<synchronous>, transform_indices = @transform_6, window_bounds = array<i64: 1, 32>}, {pipeline_mode = #tpu.pipeline_mode<synchronous>, transform_indices = @transform_7, window_bounds = array<i64: 32, 256>}, {pipeline_mode = #tpu.pipeline_mode<synchronous>, transform_indices = @transform_8, window_bounds = array<i64: 1, 256>}, {pipeline_mode = #tpu.pipeline_mode<synchronous>, transform_indices = @transform_9, window_bounds = array<i64: 256, 32>}, {pipeline_mode = #tpu.pipeline_mode<synchronous>, transform_indices = @transform_10, window_bounds = array<i64: 1, 32>}, {pipeline_mode = #tpu.pipeline_mode<synchronous>, transform_indices = @transform_11, window_bounds = array<i64: 1, 32>}, {pipeline_mode = #tpu.pipeline_mode<synchronous>, transform_indices = @transform_12, window_bounds = array<i64: 1, 32>}, {transform_indices = @transform_13, window_bounds = array<i64: 16, 32>}]} {
    %c0 = arith.constant 0 : index
    %c0_0 = arith.constant 0 : index
    %0 = vector.load %arg1[%c0, %c0_0] : memref<16x32xf32, #tpu.memory_space<vmem>>, vector<16x32xf32>
    %1 = arith.truncf %0 : vector<16x32xf32> to vector<16x32xbf16>
    %c0_1 = arith.constant 0 : index
    %c0_2 = arith.constant 0 : index
    %2 = vector.load %arg2[%c0_1, %c0_2] : memref<32x96xbf16, #tpu.memory_space<vmem>>, vector<32x96xbf16>
    %cst = arith.constant dense<0.000000e+00> : vector<16x96xf32>
    %3 = tpu.matmul %1, %2, %cst {dimension_numbers = #tpu.dot_dimension_numbers<[1], [0], [0], [1], [0, 0, 1, 1], [], []>} : vector<16x32xbf16>, vector<32x96xbf16>, vector<16x96xf32> -> vector<16x96xf32>
    %c0_3 = arith.constant 0 : index
    %c0_4 = arith.constant 0 : index
    %4 = vector.load %arg3[%c0_3, %c0_4] : memref<1x96xf32, #tpu.memory_space<vmem>>, vector<1x96xf32>
    %5 = vector.broadcast %4 : vector<1x96xf32> to vector<16x96xf32>
    %6 = arith.addf %3, %5 : vector<16x96xf32>
    %7 = vector.shape_cast %6 : vector<16x96xf32> to vector<1x16x96xf32>
    %cst_5 = arith.constant 0.000000e+00 : f32
    %8 = vector.broadcast %cst_5 : f32 to vector<16x32xf32>
    %9 = vector.extract_strided_slice %7 {offsets = [0, 0, 0], sizes = [1, 16, 8], strides = [1, 1, 1]} : vector<1x16x96xf32> to vector<1x16x8xf32>
    %10 = vector.extract_strided_slice %7 {offsets = [0, 0, 32], sizes = [1, 16, 8], strides = [1, 1, 1]} : vector<1x16x96xf32> to vector<1x16x8xf32>
    %11 = vector.extract_strided_slice %7 {offsets = [0, 0, 64], sizes = [1, 16, 8], strides = [1, 1, 1]} : vector<1x16x96xf32> to vector<1x16x8xf32>
    %cst_6 = arith.constant 0.353553385 : f32
    %12 = vector.broadcast %cst_6 : f32 to vector<1x16x8xf32>
    %13 = arith.mulf %9, %12 : vector<1x16x8xf32>
    %14 = arith.truncf %13 : vector<1x16x8xf32> to vector<1x16x8xbf16>
    %15 = arith.truncf %10 : vector<1x16x8xf32> to vector<1x16x8xbf16>
    "tpu.trace_start"() <{level = 10 : i32, message = "bqd,bkd->bqk"}> : () -> ()
    %cst_7 = arith.constant dense<0.000000e+00> : vector<1x16x16xf32>
    %16 = tpu.matmul %14, %15, %cst_7 {dimension_numbers = #tpu.dot_dimension_numbers<[2], [2], [1], [1], [0, 0, 0, 1, 1, 1], [0], [0]>} : vector<1x16x8xbf16>, vector<1x16x8xbf16>, vector<1x16x16xf32> -> vector<1x16x16xf32>
    "tpu.trace_stop"() : () -> ()
    %cst_8 = arith.constant dense<0xFF800000> : vector<1x16xf32>
    %17 = vector.multi_reduction <maximumf>, %16, %cst_8 [2] : vector<1x16x16xf32> to vector<1x16xf32>
    %18 = vector.shape_cast %17 : vector<1x16xf32> to vector<1x16x1xf32>
    %19 = vector.broadcast %18 : vector<1x16x1xf32> to vector<1x16x16xf32>
    %20 = arith.subf %16, %19 : vector<1x16x16xf32>
    %21 = math.exp %20 : vector<1x16x16xf32>
    %cst_9 = arith.constant dense<0.000000e+00> : vector<1x16xf32>
    %22 = vector.multi_reduction <add>, %21, %cst_9 [2] : vector<1x16x16xf32> to vector<1x16xf32>
    %23 = vector.shape_cast %22 : vector<1x16xf32> to vector<1x16x1xf32>
    %24 = tpu.reciprocal %23 {approx = true} : vector<1x16x1xf32> -> vector<1x16x1xf32>
    %25 = vector.broadcast %24 : vector<1x16x1xf32> to vector<1x16x16xf32>
    %26 = arith.mulf %21, %25 : vector<1x16x16xf32>
    %27 = arith.truncf %26 : vector<1x16x16xf32> to vector<1x16x16xbf16>
    %28 = arith.truncf %11 : vector<1x16x8xf32> to vector<1x16x8xbf16>
    "tpu.trace_start"() <{level = 10 : i32, message = "bqk,bkd->bqd"}> : () -> ()
    %cst_10 = arith.constant dense<0.000000e+00> : vector<1x16x8xf32>
    %29 = tpu.matmul %27, %28, %cst_10 {dimension_numbers = #tpu.dot_dimension_numbers<[2], [1], [1], [2], [0, 0, 0, 1, 1, 2], [0], [0]>} : vector<1x16x16xbf16>, vector<1x16x8xbf16>, vector<1x16x8xf32> -> vector<1x16x8xf32>
    "tpu.trace_stop"() : () -> ()
    %30 = vector.shape_cast %29 : vector<1x16x8xf32> to vector<16x8xf32>
    %31 = arith.truncf %30 : vector<16x8xf32> to vector<16x8xbf16>
    %c0_11 = arith.constant 0 : index
    %c0_12 = arith.constant 0 : index
    %c0_13 = arith.constant 0 : index
    %32 = vector.load %arg4[%c0_11, %c0_12, %c0_13] : memref<4x8x32xbf16, #tpu.memory_space<vmem>>, vector<1x8x32xbf16>
    %33 = vector.shape_cast %32 : vector<1x8x32xbf16> to vector<8x32xbf16>
    %cst_14 = arith.constant dense<0.000000e+00> : vector<16x32xf32>
    %34 = tpu.matmul %31, %33, %cst_14 {dimension_numbers = #tpu.dot_dimension_numbers<[1], [0], [0], [1], [0, 0, 1, 1], [], []>} : vector<16x8xbf16>, vector<8x32xbf16>, vector<16x32xf32> -> vector<16x32xf32>
    %35 = arith.addf %8, %34 : vector<16x32xf32>
    %36 = vector.extract_strided_slice %7 {offsets = [0, 0, 8], sizes = [1, 16, 8], strides = [1, 1, 1]} : vector<1x16x96xf32> to vector<1x16x8xf32>
    %37 = vector.extract_strided_slice %7 {offsets = [0, 0, 40], sizes = [1, 16, 8], strides = [1, 1, 1]} : vector<1x16x96xf32> to vector<1x16x8xf32>
    %38 = vector.extract_strided_slice %7 {offsets = [0, 0, 72], sizes = [1, 16, 8], strides = [1, 1, 1]} : vector<1x16x96xf32> to vector<1x16x8xf32>
    %cst_15 = arith.constant 0.353553385 : f32
    %39 = vector.broadcast %cst_15 : f32 to vector<1x16x8xf32>
    %40 = arith.mulf %36, %39 : vector<1x16x8xf32>
    %41 = arith.truncf %40 : vector<1x16x8xf32> to vector<1x16x8xbf16>
    %42 = arith.truncf %37 : vector<1x16x8xf32> to vector<1x16x8xbf16>
    "tpu.trace_start"() <{level = 10 : i32, message = "bqd,bkd->bqk"}> : () -> ()
    %cst_16 = arith.constant dense<0.000000e+00> : vector<1x16x16xf32>
    %43 = tpu.matmul %41, %42, %cst_16 {dimension_numbers = #tpu.dot_dimension_numbers<[2], [2], [1], [1], [0, 0, 0, 1, 1, 1], [0], [0]>} : vector<1x16x8xbf16>, vector<1x16x8xbf16>, vector<1x16x16xf32> -> vector<1x16x16xf32>
    "tpu.trace_stop"() : () -> ()
    %cst_17 = arith.constant dense<0xFF800000> : vector<1x16xf32>
    %44 = vector.multi_reduction <maximumf>, %43, %cst_17 [2] : vector<1x16x16xf32> to vector<1x16xf32>
    %45 = vector.shape_cast %44 : vector<1x16xf32> to vector<1x16x1xf32>
    %46 = vector.broadcast %45 : vector<1x16x1xf32> to vector<1x16x16xf32>
    %47 = arith.subf %43, %46 : vector<1x16x16xf32>
    %48 = math.exp %47 : vector<1x16x16xf32>
    %cst_18 = arith.constant dense<0.000000e+00> : vector<1x16xf32>
    %49 = vector.multi_reduction <add>, %48, %cst_18 [2] : vector<1x16x16xf32> to vector<1x16xf32>
    %50 = vector.shape_cast %49 : vector<1x16xf32> to vector<1x16x1xf32>
    %51 = tpu.reciprocal %50 {approx = true} : vector<1x16x1xf32> -> vector<1x16x1xf32>
    %52 = vector.broadcast %51 : vector<1x16x1xf32> to vector<1x16x16xf32>
    %53 = arith.mulf %48, %52 : vector<1x16x16xf32>
    %54 = arith.truncf %53 : vector<1x16x16xf32> to vector<1x16x16xbf16>
    %55 = arith.truncf %38 : vector<1x16x8xf32> to vector<1x16x8xbf16>
    "tpu.trace_start"() <{level = 10 : i32, message = "bqk,bkd->bqd"}> : () -> ()
    %cst_19 = arith.constant dense<0.000000e+00> : vector<1x16x8xf32>
    %56 = tpu.matmul %54, %55, %cst_19 {dimension_numbers = #tpu.dot_dimension_numbers<[2], [1], [1], [2], [0, 0, 0, 1, 1, 2], [0], [0]>} : vector<1x16x16xbf16>, vector<1x16x8xbf16>, vector<1x16x8xf32> -> vector<1x16x8xf32>
    "tpu.trace_stop"() : () -> ()
    %57 = vector.shape_cast %56 : vector<1x16x8xf32> to vector<16x8xf32>
    %58 = arith.truncf %57 : vector<16x8xf32> to vector<16x8xbf16>
    %c1 = arith.constant 1 : index
    %c0_20 = arith.constant 0 : index
    %c0_21 = arith.constant 0 : index
    %59 = vector.load %arg4[%c1, %c0_20, %c0_21] : memref<4x8x32xbf16, #tpu.memory_space<vmem>>, vector<1x8x32xbf16>
    %60 = vector.shape_cast %59 : vector<1x8x32xbf16> to vector<8x32xbf16>
    %cst_22 = arith.constant dense<0.000000e+00> : vector<16x32xf32>
    %61 = tpu.matmul %58, %60, %cst_22 {dimension_numbers = #tpu.dot_dimension_numbers<[1], [0], [0], [1], [0, 0, 1, 1], [], []>} : vector<16x8xbf16>, vector<8x32xbf16>, vector<16x32xf32> -> vector<16x32xf32>
    %62 = arith.addf %35, %61 : vector<16x32xf32>
    %63 = vector.extract_strided_slice %7 {offsets = [0, 0, 16], sizes = [1, 16, 8], strides = [1, 1, 1]} : vector<1x16x96xf32> to vector<1x16x8xf32>
    %64 = vector.extract_strided_slice %7 {offsets = [0, 0, 48], sizes = [1, 16, 8], strides = [1, 1, 1]} : vector<1x16x96xf32> to vector<1x16x8xf32>
    %65 = vector.extract_strided_slice %7 {offsets = [0, 0, 80], sizes = [1, 16, 8], strides = [1, 1, 1]} : vector<1x16x96xf32> to vector<1x16x8xf32>
    %cst_23 = arith.constant 0.353553385 : f32
    %66 = vector.broadcast %cst_23 : f32 to vector<1x16x8xf32>
    %67 = arith.mulf %63, %66 : vector<1x16x8xf32>
    %68 = arith.truncf %67 : vector<1x16x8xf32> to vector<1x16x8xbf16>
    %69 = arith.truncf %64 : vector<1x16x8xf32> to vector<1x16x8xbf16>
    "tpu.trace_start"() <{level = 10 : i32, message = "bqd,bkd->bqk"}> : () -> ()
    %cst_24 = arith.constant dense<0.000000e+00> : vector<1x16x16xf32>
    %70 = tpu.matmul %68, %69, %cst_24 {dimension_numbers = #tpu.dot_dimension_numbers<[2], [2], [1], [1], [0, 0, 0, 1, 1, 1], [0], [0]>} : vector<1x16x8xbf16>, vector<1x16x8xbf16>, vector<1x16x16xf32> -> vector<1x16x16xf32>
    "tpu.trace_stop"() : () -> ()
    %cst_25 = arith.constant dense<0xFF800000> : vector<1x16xf32>
    %71 = vector.multi_reduction <maximumf>, %70, %cst_25 [2] : vector<1x16x16xf32> to vector<1x16xf32>
    %72 = vector.shape_cast %71 : vector<1x16xf32> to vector<1x16x1xf32>
    %73 = vector.broadcast %72 : vector<1x16x1xf32> to vector<1x16x16xf32>
    %74 = arith.subf %70, %73 : vector<1x16x16xf32>
    %75 = math.exp %74 : vector<1x16x16xf32>
    %cst_26 = arith.constant dense<0.000000e+00> : vector<1x16xf32>
    %76 = vector.multi_reduction <add>, %75, %cst_26 [2] : vector<1x16x16xf32> to vector<1x16xf32>
    %77 = vector.shape_cast %76 : vector<1x16xf32> to vector<1x16x1xf32>
    %78 = tpu.reciprocal %77 {approx = true} : vector<1x16x1xf32> -> vector<1x16x1xf32>
    %79 = vector.broadcast %78 : vector<1x16x1xf32> to vector<1x16x16xf32>
    %80 = arith.mulf %75, %79 : vector<1x16x16xf32>
    %81 = arith.truncf %80 : vector<1x16x16xf32> to vector<1x16x16xbf16>
    %82 = arith.truncf %65 : vector<1x16x8xf32> to vector<1x16x8xbf16>
    "tpu.trace_start"() <{level = 10 : i32, message = "bqk,bkd->bqd"}> : () -> ()
    %cst_27 = arith.constant dense<0.000000e+00> : vector<1x16x8xf32>
    %83 = tpu.matmul %81, %82, %cst_27 {dimension_numbers = #tpu.dot_dimension_numbers<[2], [1], [1], [2], [0, 0, 0, 1, 1, 2], [0], [0]>} : vector<1x16x16xbf16>, vector<1x16x8xbf16>, vector<1x16x8xf32> -> vector<1x16x8xf32>
    "tpu.trace_stop"() : () -> ()
    %84 = vector.shape_cast %83 : vector<1x16x8xf32> to vector<16x8xf32>
    %85 = arith.truncf %84 : vector<16x8xf32> to vector<16x8xbf16>
    %c2 = arith.constant 2 : index
    %c0_28 = arith.constant 0 : index
    %c0_29 = arith.constant 0 : index
    %86 = vector.load %arg4[%c2, %c0_28, %c0_29] : memref<4x8x32xbf16, #tpu.memory_space<vmem>>, vector<1x8x32xbf16>
    %87 = vector.shape_cast %86 : vector<1x8x32xbf16> to vector<8x32xbf16>
    %cst_30 = arith.constant dense<0.000000e+00> : vector<16x32xf32>
    %88 = tpu.matmul %85, %87, %cst_30 {dimension_numbers = #tpu.dot_dimension_numbers<[1], [0], [0], [1], [0, 0, 1, 1], [], []>} : vector<16x8xbf16>, vector<8x32xbf16>, vector<16x32xf32> -> vector<16x32xf32>
    %89 = arith.addf %62, %88 : vector<16x32xf32>
    %90 = vector.extract_strided_slice %7 {offsets = [0, 0, 24], sizes = [1, 16, 8], strides = [1, 1, 1]} : vector<1x16x96xf32> to vector<1x16x8xf32>
    %91 = vector.extract_strided_slice %7 {offsets = [0, 0, 56], sizes = [1, 16, 8], strides = [1, 1, 1]} : vector<1x16x96xf32> to vector<1x16x8xf32>
    %92 = vector.extract_strided_slice %7 {offsets = [0, 0, 88], sizes = [1, 16, 8], strides = [1, 1, 1]} : vector<1x16x96xf32> to vector<1x16x8xf32>
    %cst_31 = arith.constant 0.353553385 : f32
    %93 = vector.broadcast %cst_31 : f32 to vector<1x16x8xf32>
    %94 = arith.mulf %90, %93 : vector<1x16x8xf32>
    %95 = arith.truncf %94 : vector<1x16x8xf32> to vector<1x16x8xbf16>
    %96 = arith.truncf %91 : vector<1x16x8xf32> to vector<1x16x8xbf16>
    "tpu.trace_start"() <{level = 10 : i32, message = "bqd,bkd->bqk"}> : () -> ()
    %cst_32 = arith.constant dense<0.000000e+00> : vector<1x16x16xf32>
    %97 = tpu.matmul %95, %96, %cst_32 {dimension_numbers = #tpu.dot_dimension_numbers<[2], [2], [1], [1], [0, 0, 0, 1, 1, 1], [0], [0]>} : vector<1x16x8xbf16>, vector<1x16x8xbf16>, vector<1x16x16xf32> -> vector<1x16x16xf32>
    "tpu.trace_stop"() : () -> ()
    %cst_33 = arith.constant dense<0xFF800000> : vector<1x16xf32>
    %98 = vector.multi_reduction <maximumf>, %97, %cst_33 [2] : vector<1x16x16xf32> to vector<1x16xf32>
    %99 = vector.shape_cast %98 : vector<1x16xf32> to vector<1x16x1xf32>
    %100 = vector.broadcast %99 : vector<1x16x1xf32> to vector<1x16x16xf32>
    %101 = arith.subf %97, %100 : vector<1x16x16xf32>
    %102 = math.exp %101 : vector<1x16x16xf32>
    %cst_34 = arith.constant dense<0.000000e+00> : vector<1x16xf32>
    %103 = vector.multi_reduction <add>, %102, %cst_34 [2] : vector<1x16x16xf32> to vector<1x16xf32>
    %104 = vector.shape_cast %103 : vector<1x16xf32> to vector<1x16x1xf32>
    %105 = tpu.reciprocal %104 {approx = true} : vector<1x16x1xf32> -> vector<1x16x1xf32>
    %106 = vector.broadcast %105 : vector<1x16x1xf32> to vector<1x16x16xf32>
    %107 = arith.mulf %102, %106 : vector<1x16x16xf32>
    %108 = arith.truncf %107 : vector<1x16x16xf32> to vector<1x16x16xbf16>
    %109 = arith.truncf %92 : vector<1x16x8xf32> to vector<1x16x8xbf16>
    "tpu.trace_start"() <{level = 10 : i32, message = "bqk,bkd->bqd"}> : () -> ()
    %cst_35 = arith.constant dense<0.000000e+00> : vector<1x16x8xf32>
    %110 = tpu.matmul %108, %109, %cst_35 {dimension_numbers = #tpu.dot_dimension_numbers<[2], [1], [1], [2], [0, 0, 0, 1, 1, 2], [0], [0]>} : vector<1x16x16xbf16>, vector<1x16x8xbf16>, vector<1x16x8xf32> -> vector<1x16x8xf32>
    "tpu.trace_stop"() : () -> ()
    %111 = vector.shape_cast %110 : vector<1x16x8xf32> to vector<16x8xf32>
    %112 = arith.truncf %111 : vector<16x8xf32> to vector<16x8xbf16>
    %c3 = arith.constant 3 : index
    %c0_36 = arith.constant 0 : index
    %c0_37 = arith.constant 0 : index
    %113 = vector.load %arg4[%c3, %c0_36, %c0_37] : memref<4x8x32xbf16, #tpu.memory_space<vmem>>, vector<1x8x32xbf16>
    %114 = vector.shape_cast %113 : vector<1x8x32xbf16> to vector<8x32xbf16>
    %cst_38 = arith.constant dense<0.000000e+00> : vector<16x32xf32>
    %115 = tpu.matmul %112, %114, %cst_38 {dimension_numbers = #tpu.dot_dimension_numbers<[1], [0], [0], [1], [0, 0, 1, 1], [], []>} : vector<16x8xbf16>, vector<8x32xbf16>, vector<16x32xf32> -> vector<16x32xf32>
    %116 = arith.addf %89, %115 : vector<16x32xf32>
    %c0_39 = arith.constant 0 : index
    %c0_40 = arith.constant 0 : index
    %117 = vector.load %arg5[%c0_39, %c0_40] : memref<1x32xf32, #tpu.memory_space<vmem>>, vector<1x32xf32>
    %118 = vector.broadcast %117 : vector<1x32xf32> to vector<16x32xf32>
    %119 = arith.addf %116, %118 : vector<16x32xf32>
    %120 = arith.addf %0, %119 : vector<16x32xf32>
    %c0_41 = arith.constant 0 : index
    %c0_42 = arith.constant 0 : index
    %121 = vector.load %arg6[%c0_41, %c0_42] : memref<1x32xf32, #tpu.memory_space<vmem>>, vector<1x32xf32>
    %c0_43 = arith.constant 0 : index
    %c0_44 = arith.constant 0 : index
    %122 = vector.load %arg7[%c0_43, %c0_44] : memref<1x32xf32, #tpu.memory_space<vmem>>, vector<1x32xf32>
    %cst_45 = arith.constant dense<0.000000e+00> : vector<16xf32>
    %123 = vector.multi_reduction <add>, %120, %cst_45 [1] : vector<16x32xf32> to vector<16xf32>
    %124 = vector.shape_cast %123 : vector<16xf32> to vector<16x1xf32>
    %cst_46 = arith.constant 3.200000e+01 : f32
    %125 = vector.broadcast %cst_46 : f32 to vector<16x1xf32>
    %126 = arith.divf %124, %125 : vector<16x1xf32>
    %127 = vector.broadcast %126 : vector<16x1xf32> to vector<16x32xf32>
    %128 = arith.subf %120, %127 : vector<16x32xf32>
    %129 = arith.mulf %128, %128 : vector<16x32xf32>
    %cst_47 = arith.constant dense<0.000000e+00> : vector<16xf32>
    %130 = vector.multi_reduction <add>, %129, %cst_47 [1] : vector<16x32xf32> to vector<16xf32>
    %131 = vector.shape_cast %130 : vector<16xf32> to vector<16x1xf32>
    %cst_48 = arith.constant 3.200000e+01 : f32
    %132 = vector.broadcast %cst_48 : f32 to vector<16x1xf32>
    %133 = arith.divf %131, %132 : vector<16x1xf32>
    %cst_49 = arith.constant 9.99999974E-6 : f32
    %134 = vector.broadcast %cst_49 : f32 to vector<16x1xf32>
    %135 = arith.addf %133, %134 : vector<16x1xf32>
    %136 = math.rsqrt %135 : vector<16x1xf32>
    %137 = vector.broadcast %136 : vector<16x1xf32> to vector<16x32xf32>
    %138 = arith.mulf %128, %137 : vector<16x32xf32>
    %139 = vector.broadcast %121 : vector<1x32xf32> to vector<16x32xf32>
    %140 = arith.mulf %138, %139 : vector<16x32xf32>
    %141 = vector.broadcast %122 : vector<1x32xf32> to vector<16x32xf32>
    %142 = arith.addf %140, %141 : vector<16x32xf32>
    %143 = arith.truncf %142 : vector<16x32xf32> to vector<16x32xbf16>
    %c0_50 = arith.constant 0 : index
    %c0_51 = arith.constant 0 : index
    %144 = vector.load %arg8[%c0_50, %c0_51] : memref<32x256xbf16, #tpu.memory_space<vmem>>, vector<32x256xbf16>
    %cst_52 = arith.constant dense<0.000000e+00> : vector<16x256xf32>
    %145 = tpu.matmul %143, %144, %cst_52 {dimension_numbers = #tpu.dot_dimension_numbers<[1], [0], [0], [1], [0, 0, 1, 1], [], []>} : vector<16x32xbf16>, vector<32x256xbf16>, vector<16x256xf32> -> vector<16x256xf32>
    %c0_53 = arith.constant 0 : index
    %c0_54 = arith.constant 0 : index
    %146 = vector.load %arg9[%c0_53, %c0_54] : memref<1x256xf32, #tpu.memory_space<vmem>>, vector<1x256xf32>
    %147 = vector.broadcast %146 : vector<1x256xf32> to vector<16x256xf32>
    %148 = arith.addf %145, %147 : vector<16x256xf32>
    %cst_55 = arith.constant 0.000000e+00 : f32
    %149 = vector.broadcast %cst_55 : f32 to vector<16x256xf32>
    %150 = arith.maximumf %148, %149 : vector<16x256xf32>
    %151 = arith.truncf %150 : vector<16x256xf32> to vector<16x256xbf16>
    %c0_56 = arith.constant 0 : index
    %c0_57 = arith.constant 0 : index
    %152 = vector.load %arg10[%c0_56, %c0_57] : memref<256x32xbf16, #tpu.memory_space<vmem>>, vector<256x32xbf16>
    %cst_58 = arith.constant dense<0.000000e+00> : vector<16x32xf32>
    %153 = tpu.matmul %151, %152, %cst_58 {dimension_numbers = #tpu.dot_dimension_numbers<[1], [0], [0], [1], [0, 0, 1, 1], [], []>} : vector<16x256xbf16>, vector<256x32xbf16>, vector<16x32xf32> -> vector<16x32xf32>
    %c0_59 = arith.constant 0 : index
    %c0_60 = arith.constant 0 : index
    %154 = vector.load %arg11[%c0_59, %c0_60] : memref<1x32xf32, #tpu.memory_space<vmem>>, vector<1x32xf32>
    %155 = vector.broadcast %154 : vector<1x32xf32> to vector<16x32xf32>
    %156 = arith.addf %153, %155 : vector<16x32xf32>
    %157 = arith.addf %142, %156 : vector<16x32xf32>
    %c0_61 = arith.constant 0 : index
    %c0_62 = arith.constant 0 : index
    %158 = vector.load %arg12[%c0_61, %c0_62] : memref<1x32xf32, #tpu.memory_space<vmem>>, vector<1x32xf32>
    %c0_63 = arith.constant 0 : index
    %c0_64 = arith.constant 0 : index
    %159 = vector.load %arg13[%c0_63, %c0_64] : memref<1x32xf32, #tpu.memory_space<vmem>>, vector<1x32xf32>
    %cst_65 = arith.constant dense<0.000000e+00> : vector<16xf32>
    %160 = vector.multi_reduction <add>, %157, %cst_65 [1] : vector<16x32xf32> to vector<16xf32>
    %161 = vector.shape_cast %160 : vector<16xf32> to vector<16x1xf32>
    %cst_66 = arith.constant 3.200000e+01 : f32
    %162 = vector.broadcast %cst_66 : f32 to vector<16x1xf32>
    %163 = arith.divf %161, %162 : vector<16x1xf32>
    %164 = vector.broadcast %163 : vector<16x1xf32> to vector<16x32xf32>
    %165 = arith.subf %157, %164 : vector<16x32xf32>
    %166 = arith.mulf %165, %165 : vector<16x32xf32>
    %cst_67 = arith.constant dense<0.000000e+00> : vector<16xf32>
    %167 = vector.multi_reduction <add>, %166, %cst_67 [1] : vector<16x32xf32> to vector<16xf32>
    %168 = vector.shape_cast %167 : vector<16xf32> to vector<16x1xf32>
    %cst_68 = arith.constant 3.200000e+01 : f32
    %169 = vector.broadcast %cst_68 : f32 to vector<16x1xf32>
    %170 = arith.divf %168, %169 : vector<16x1xf32>
    %cst_69 = arith.constant 9.99999974E-6 : f32
    %171 = vector.broadcast %cst_69 : f32 to vector<16x1xf32>
    %172 = arith.addf %170, %171 : vector<16x1xf32>
    %173 = math.rsqrt %172 : vector<16x1xf32>
    %174 = vector.broadcast %173 : vector<16x1xf32> to vector<16x32xf32>
    %175 = arith.mulf %165, %174 : vector<16x32xf32>
    %176 = vector.broadcast %158 : vector<1x32xf32> to vector<16x32xf32>
    %177 = arith.mulf %175, %176 : vector<16x32xf32>
    %178 = vector.broadcast %159 : vector<1x32xf32> to vector<16x32xf32>
    %179 = arith.addf %177, %178 : vector<16x32xf32>
    %c0_70 = arith.constant 0 : index
    %c0_71 = arith.constant 0 : index
    %180 = vector.load %arg14[%c0_70, %c0_71] : memref<16x32xf32, #tpu.memory_space<vmem>>, vector<16x32xf32>
    tpu.vector_store %arg14[%c0_70, %c0_71], %179 {strides = array<i32>} : memref<16x32xf32, #tpu.memory_space<vmem>>, vector<16x32xf32>,
    return
  }
  func.func @transform_0(%arg0: i32) -> (i32, i32) {
    %c0_i32 = arith.constant 0 : i32
    %c0_i32_0 = arith.constant 0 : i32
    return %arg0, %c0_i32 : i32, i32
  }
  func.func @transform_1(%arg0: i32) -> (i32, i32) {
    %c0_i32 = arith.constant 0 : i32
    %c0_i32_0 = arith.constant 0 : i32
    %c0_i32_1 = arith.constant 0 : i32
    return %c0_i32, %c0_i32_0 : i32, i32
  }
  func.func @transform_2(%arg0: i32) -> (i32, i32) {
    %c0_i32 = arith.constant 0 : i32
    %c0_i32_0 = arith.constant 0 : i32
    %c0_i32_1 = arith.constant 0 : i32
    return %c0_i32, %c0_i32_0 : i32, i32
  }
  func.func @transform_3(%arg0: i32) -> (i32, i32, i32) {
    %c0_i32 = arith.constant 0 : i32
    %c0_i32_0 = arith.constant 0 : i32
    %c0_i32_1 = arith.constant 0 : i32
    %c0_i32_2 = arith.constant 0 : i32
    return %c0_i32, %c0_i32_0, %c0_i32_1 : i32, i32, i32
  }
  func.func @transform_4(%arg0: i32) -> (i32, i32) {
    %c0_i32 = arith.constant 0 : i32
    %c0_i32_0 = arith.constant 0 : i32
    %c0_i32_1 = arith.constant 0 : i32
    return %c0_i32, %c0_i32_0 : i32, i32
  }
  func.func @transform_5(%arg0: i32) -> (i32, i32) {
    %c0_i32 = arith.constant 0 : i32
    %c0_i32_0 = arith.constant 0 : i32
    %c0_i32_1 = arith.constant 0 : i32
    return %c0_i32, %c0_i32_0 : i32, i32
  }
  func.func @transform_6(%arg0: i32) -> (i32, i32) {
    %c0_i32 = arith.constant 0 : i32
    %c0_i32_0 = arith.constant 0 : i32
    %c0_i32_1 = arith.constant 0 : i32
    return %c0_i32, %c0_i32_0 : i32, i32
  }
  func.func @transform_7(%arg0: i32) -> (i32, i32) {
    %c0_i32 = arith.constant 0 : i32
    %c0_i32_0 = arith.constant 0 : i32
    %c0_i32_1 = arith.constant 0 : i32
    return %c0_i32, %c0_i32_0 : i32, i32
  }
  func.func @transform_8(%arg0: i32) -> (i32, i32) {
    %c0_i32 = arith.constant 0 : i32
    %c0_i32_0 = arith.constant 0 : i32
    %c0_i32_1 = arith.constant 0 : i32
    return %c0_i32, %c0_i32_0 : i32, i32
  }
  func.func @transform_9(%arg0: i32) -> (i32, i32) {
    %c0_i32 = arith.constant 0 : i32
    %c0_i32_0 = arith.constant 0 : i32
    %c0_i32_1 = arith.constant 0 : i32
    return %c0_i32, %c0_i32_0 : i32, i32
  }
  func.func @transform_10(%arg0: i32) -> (i32, i32) {
    %c0_i32 = arith.constant 0 : i32
    %c0_i32_0 = arith.constant 0 : i32
    %c0_i32_1 = arith.constant 0 : i32
    return %c0_i32, %c0_i32_0 : i32, i32
  }
  func.func @transform_11(%arg0: i32) -> (i32, i32) {
    %c0_i32 = arith.constant 0 : i32
    %c0_i32_0 = arith.constant 0 : i32
    %c0_i32_1 = arith.constant 0 : i32
    return %c0_i32, %c0_i32_0 : i32, i32
  }
  func.func @transform_12(%arg0: i32) -> (i32, i32) {
    %c0_i32 = arith.constant 0 : i32
    %c0_i32_0 = arith.constant 0 : i32
    %c0_i32_1 = arith.constant 0 : i32
    return %c0_i32, %c0_i32_0 : i32, i32
  }
  func.func @transform_13(%arg0: i32) -> (i32, i32) {
    %c0_i32 = arith.constant 0 : i32
    %c0_i32_0 = arith.constant 0 : i32
    return %arg0, %c0_i32 : i32, i32
  }
}

</mosaic_0001>

<bundles_post_ra>
// kernel: tpu_custom_call.1
= control target key start
LH: loop header
LB: loop body
LE: loop exit
PB: predicated region body
PF: predicated region fallthrough
CT: control target
= control target key end

     0   :  { %s1999_s25 = smov 0   ;;  %s2249_s0 = inlined_call_operand.vmem [shape: f32[64,32], index: 0, kind: input, shape index: {}]   ;;  %s2250_s1 = inlined_call_operand.vmem [shape: bf16[32,96], index: 1, kind: input, shape index: {}]   ;;  %s2251_s2 = inlined_call_operand.vmem [shape: f32[1,96], index: 2, kind: input, shape index: {}]   ;;  %s2252_s3 = inlined_call_operand.vmem [shape: bf16[4,8,32], index: 3, kind: input, shape index: {}]   ;;  %s2253_s4 = inlined_call_operand.vmem [shape: f32[1,32], index: 4, kind: input, shape index: {}]   ;;  %s2254_s5 = inlined_call_operand.vmem [shape: f32[1,32], index: 5, kind: input, shape index: {}]   ;;  %s2255_s6 = inlined_call_operand.vmem [shape: f32[1,32], index: 6, kind: input, shape index: {}]   ;;  %s2256_s7 = inlined_call_operand.vmem [shape: bf16[32,256], index: 7, kind: input, shape index: {}]   ;;  %s2257_s8 = inlined_call_operand.vmem [shape: f32[1,256], index: 8, kind: input, shape index: {}]   ;;  %s2258_s9 = inlined_call_operand.vmem [shape: bf16[256,32], index: 9, kind: input, shape index: {}]   ;;  %s2259_s10 = inlined_call_operand.vmem [shape: f32[1,32], index: 10, kind: input, shape index: {}]   ;;  %s2260_s11 = inlined_call_operand.vmem [shape: f32[1,32], index: 11, kind: input, shape index: {}]   ;;  %s2261_s12 = inlined_call_operand.vmem [shape: f32[1,32], index: 12, kind: input, shape index: {}]   ;;  %s2262_s13 = inlined_call_operand.vmem [shape: f32[64,32], index: 13, kind: output, shape index: {}]  }
   0x1 LB: > { %s1635_s26 = sadd.s32 4294967295, %s1913_s25   ;;  %p1639_p0 = scmp.ge.s32.totalorder %s1913_s25, 1  ;;  %s1913_s25 = sphi %s1999_s25, %s23_s25  }
   0x2   : > { %p388_p1 = scmp.lt.s32.totalorder %s1913_s25, 5 }
   0x4   : > { %p389_p2 = pnand %p1639_p0, %p388_p1 }
   0x5   : > { %s1640_s14 = sshll.u32 (!%p389_p2), %s1635_s26, 1  ;;  %s1917_s21 = smov (!%p389_p2), 96  }
   0x6   : > { %392 = sbr.rel (%p389_p2) target bundleno = 4043 (0xfcb), region = 72  ;;  %p433_p3 = scmp.lt.s32.totalorder (!%p389_p2), %s1640_s14, 7 }
   0x7   : > { %s1918_s22 = smov (!%p389_p2), 64   ;;  %s1919_s23 = smov (!%p389_p2), 88  }
   0x8   : > { %s1920_s24 = smov (!%p389_p2), 120   ;;  %s1921_s26 = smov (!%p389_p2), 56  }
   0x9   : > { %s1922_s27 = smov (!%p389_p2), 80   ;;  %s1923_s28 = smov (!%p389_p2), 112  }
   0xa   : > { %s1925_s19 = smov (!%p389_p2), 72   ;;  %s1926_s20 = smov (!%p389_p2), 104  }
   0xb   : > { %v1843_v0 = vld [vmem:[%s2250_s1 + $0x8] sm:$0xff]   ;;  %v1915_v1 = vmov 0.0   ;;  %v1844_v2 = vld [vmem:[%s2250_s1] sm:$0xff]   ;;  %vm1916_vm0 = vmmov 0   ;;  %s2264_s14 = smov (!%p433_p3, %s1640_s14), 7  ;;  %vm471_vm1 = vcmask 261120  }
   0xc   : > { %1741 = vmatprep.subr.bf16.mxu1 %v1915_v1  ;;  %1767 = vmatprep.subr.bf16.mxu0 %v1915_v1  ;;  %s1641_s15 = sshll.u32 %s2264_s14, 3  ;;  %v1644_v6 = vld [vmem:[%s2251_s2] ss:$0 sm:$0xff]  ;;  %vm523_vm2 = vcmask 64512   ;;  %vm571_vm3 = vcmask 130048   ;;  %vm772_vm4 = vcmask 1043456  }
   0xd   : > { %1742 = vmatpush3.bf16.msra.mxu1 %v1843_v0  ;;  %1745 = vmatprep.mubr.msk.bf16.mxu1 %vm1916_vm0, %v1915_v1  ;;  %s436_s18 = scalar_lea.vmem %s2249_s0, %s1641_s15 }
   0xe   : > { %1743 = vmatprep.subr.bf16.mxu1 %v1915_v1  ;;  %1769 = vmatprep.mubr.msk.bf16.mxu0 %vm1916_vm0, %v1915_v1  ;;  %v2029_v3 = vld [vmem:[%s436_s18] sm:$0xff]  ;;  %v2031_v4 = vld [vmem:[%s436_s18 + $0x8] sm:$0xff]  ;;  %s1924_s18 = smov 48  }
   0xf   : > { %v447_v5 = vpack.c.bf16 %v2031_v4, %v2029_v3 }
  0x11   : > { %1744 = vmatpush3.bf16.msra.mxu1 %v1844_v2 }
  0x12   : > { %1749 = vmatprep.subr.bf16.mxu1 %v1915_v1 }
  0x14   : > { %1746 = vmatmul.mubr.msk.bf16.vlgmr.msra.gmra.mxu1 %vm471_vm1, %v447_v5 }
  0x15   : > { %1751 = vmatprep.mubr.msk.bf16.mxu1 %vm1916_vm0, %v1915_v1 }
  0xd4   : > { %v509_v7 = vpop.f32.mrf.mxu1 }
  0xd5   : > { %v510_v9 = vadd.f32 %v1644_v6, %v509_v7 }
  0xd6   : > { %v1747_v8 = vpop.f32.mrf.mxu1 }
  0xd7   : > { %v516_v13 = vmul.f32 0.35355338, %v510_v9 }
  0xd8   : > { %v512_v10 = vpop.f32.mrf.mxu1 }
  0xd9   : > { %v513_v11 = vadd.f32 %v1644_v6, %v512_v10 }
  0xda   : > { %v1748_v12 = vpop.f32.mrf.mxu1 }
  0xdb   : > { %v517_v14 = vmul.f32 0.35355338, %v513_v11  ;;  %v2041_v15 = vpack.c.bf16 %v513_v11, %v510_v9  ;;  %v643_v11 = vld [vmem:[%s2252_s3] sm:$0xf] }
  0xdd   : > { %v2043_v16 = vpack.c.bf16 %v517_v14, %v516_v13  ;;  %521 = vrot.lane.b32.xlu0 %v2041_v15, %s1917_s21 }
 0x14f   : > { %v522_v17 = vpop.permute.xlu0 %521 }
 0x150   : > { %v528_v18 = vsel %vm523_vm2, %v522_v17, 0  ;;  %v821_v17 = vsel %vm772_vm4, %v643_v11, 0 }
 0x151   : > { %1750 = vmatpush3.bf16.xpose.msra.mxu1 %v528_v18  ;;  %v1652_v18 = vld [vmem:[%s2252_s3 + $0x4] sm:$0xf] }
 0x152   : > { %1755 = vmatprep.subr.bf16.mxu1 %v1915_v1 }
 0x158   : > { %1752 = vmatmul.mubr.msk.bf16.vlgmr.msra.gmra.mxu1 %vm523_vm2, %v2043_v16 }
 0x159   : > { %1757 = vmatprep.mubr.msk.bf16.mxu1 %vm1916_vm0, %v1915_v1 }
 0x218   : > { %v564_v19 = vpop.f32.mrf.mxu1 }
 0x219   : > { %v572_v20 = vsel %vm571_vm3, %v564_v19, -inf }
 0x21a   : > { %573 = vmax.xlane.f32.xlu0 %v572_v20  ;;  %v1753_v21 = vpop.f32.mrf.mxu1 }
 0x21c   : > { %v567_v22 = vpop.f32.mrf.mxu1 }
 0x21d   : > { %v575_v23 = vsel %vm571_vm3, %v567_v22, -inf }
 0x21e   : > { %576 = vmax.xlane.f32.xlu1 %v575_v23  ;;  %v1754_v24 = vpop.f32.mrf.mxu1 }
 0x22f   : > { %595 = vrot.lane.b32.xlu1 %v2041_v15, %s1918_s22 }
 0x2a3   : > { %v574_v25 = vpop.xlane.xlu0 %573 }
 0x2a4   : > { %v578_v26 = vsub.f32 %v564_v19, %v574_v25  ;;  %v774_v19 = vsel %vm772_vm4, %v1652_v18, 0 }
 0x2a6   : > { %v580_v27 = vmul.f32 1.442695, %v578_v26 }
 0x2a7   : > { %v577_v28 = vpop.xlane.xlu1 %576 }
 0x2a8   : > { %1867 = vpow2.f32 %v580_v27  ;;  %v579_v29 = vsub.f32 %v567_v22, %v577_v28 }
 0x2aa   : > { %v582_v30 = vmul.f32 1.442695, %v579_v29 }
 0x2ab   : > { %v596_v31 = vpop.permute.xlu1 %595 }
 0x2ac   : > { %1869 = vpow2.f32 %v582_v30  ;;  %1756 = vmatpush3.bf16.msra.mxu1 %v596_v31 }
 0x2ad   : > { %1761 = vmatprep.subr.bf16.mxu1 %v1915_v1 }
 0x2b5   : > { %v1868_v32 = vpop.eup %1867 }
 0x2b6   : > { %v584_v33 = vsel %vm571_vm3, %v1868_v32, 0.0 }
 0x2b7   : > { %585 = vadd.xlane.f32.xlu1 %v584_v33 }
 0x2b9   : > { %v1870_v34 = vpop.eup %1869 }
 0x2ba   : > { %v587_v35 = vsel %vm571_vm3, %v1870_v34, 0.0 }
 0x2bb   : > { %588 = vadd.xlane.f32.xlu1 %v587_v35 }
 0x2cc   : > { %647 = vrot.lane.b32.xlu1 %v2041_v15, %s1919_s23  ;;  %s1927_s23 = smov 40  }
 0x2d0   : > { %645 = vrot.lane.b32.xlu1 %v2043_v16, %s1920_s24 }
 0x340   : > { %v586_v36 = vpop.xlane.xlu1 %585 }
 0x341   : > { %1871 = vrcp.f32 %v586_v36 }
 0x344   : > { %v589_v37 = vpop.xlane.xlu1 %588 }
 0x345   : > { %1873 = vrcp.f32 %v589_v37 }
 0x348   : > { %v648_v42 = vpop.permute.xlu1 %647 }
 0x349   : > { %v653_v44 = vsel %vm523_vm2, %v648_v42, 0 }
 0x34c   : > { %v646_v45 = vpop.permute.xlu1 %645 }
 0x34e   : > { %v1872_v38 = vpop.eup %1871 }
 0x34f   : > { %v592_v40 = vmul.f32 %v1872_v38, %v1868_v32 }
 0x352   : > { %v1874_v39 = vpop.eup %1873 }
 0x353   : > { %v593_v41 = vmul.f32 %v1874_v39, %v1870_v34 }
 0x355   : > { %v594_v43 = vpack.c.bf16 %v593_v41, %v592_v40 }
 0x357   : > { %1758 = vmatmul.mubr.msk.bf16.vlgmr.msra.gmra.mxu1 %vm571_vm3, %v594_v43 }
 0x358   : > { %1762 = vmatpush3.bf16.xpose.msra.mxu1 %v653_v44  ;;  %1763 = vmatprep.mubr.msk.bf16.mxu1 %vm1916_vm0, %v1915_v1 }
 0x359   : > { %1773 = vmatprep.subr.bf16.mxu1 %v1915_v1 }
 0x35f   : > { %1764 = vmatmul.mubr.msk.bf16.vlgmr.msra.gmra.mxu1 %vm523_vm2, %v646_v45 }
 0x360   : > { %1775 = vmatprep.mubr.msk.bf16.mxu1 %vm1916_vm0, %v1915_v1  ;;  %1774 = vmatpush3.bf16.msra.mxu1 %v774_v19 }
 0x361   : > { %1785 = vmatprep.subr.bf16.mxu1 %v1915_v1 }
 0x417   : > { %v635_v46 = vpop.f32.mrf.mxu1 }
 0x419   : > { %v1759_v47 = vpop.f32.mrf.mxu1 }
 0x41b   : > { %v638_v48 = vpop.f32.mrf.mxu1 }
 0x41c   : > { %v642_v49 = vpack.c.bf16 %v638_v48, %v635_v46 }
 0x41d   : > { %v1760_v50 = vpop.f32.mrf.mxu1 }
 0x41f   : > { %v689_v51 = vpop.f32.mrf.mxu1 }
 0x420   : > { %v696_v52 = vsel %vm571_vm3, %v689_v51, -inf }
 0x421   : > { %697 = vmax.xlane.f32.xlu0 %v696_v52  ;;  %v1765_v53 = vpop.f32.mrf.mxu1 }
 0x423   : > { %v692_v54 = vpop.f32.mrf.mxu1 }
 0x424   : > { %v699_v55 = vsel %vm571_vm3, %v692_v54, -inf }
 0x425   : > { %700 = vmax.xlane.f32.xlu1 %v699_v55  ;;  %v1766_v56 = vpop.f32.mrf.mxu1 }
 0x4aa   : > { %v698_v57 = vpop.xlane.xlu0 %697 }
 0x4ab   : > { %v702_v58 = vsub.f32 %v689_v51, %v698_v57 }
 0x4ad   : > { %v704_v59 = vmul.f32 1.442695, %v702_v58 }
 0x4ae   : > { %v701_v60 = vpop.xlane.xlu1 %700 }
 0x4af   : > { %1875 = vpow2.f32 %v704_v59  ;;  %v703_v61 = vsub.f32 %v692_v54, %v701_v60 }
 0x4b1   : > { %v706_v62 = vmul.f32 1.442695, %v703_v61 }
 0x4b3   : > { %1877 = vpow2.f32 %v706_v62  ;;  %v1657_v62 = vld [vmem:[%s2252_s3 + $0x8] sm:$0xf] }
 0x4bc   : > { %v1876_v63 = vpop.eup %1875 }
 0x4bd   : > { %v708_v0 = vsel %vm571_vm3, %v1876_v63, 0.0 }
 0x4be   : > { %709 = vadd.xlane.f32.xlu0 %v708_v0 }
 0x4c0   : > { %v1878_v2 = vpop.eup %1877 }
 0x4c1   : > { %v711_v5 = vsel %vm571_vm3, %v1878_v2, 0.0 }
 0x4c2   : > { %712 = vadd.xlane.f32.xlu0 %v711_v5 }
 0x4d8   : > { %719 = vrot.lane.b32.xlu0 %v2041_v15, %s1921_s26 }
 0x4dc   : > { %866 = vrot.lane.b32.xlu0 %v2041_v15, %s1922_s27  ;;  %s442_s27 = scalar_lea.vmem %s2262_s13, %s1641_s15 }
 0x4e0   : > { %864 = vrot.lane.b32.xlu0 %v2043_v16, %s1923_s28 }
 0x547   : > { %v710_v6 = vpop.xlane.xlu0 %709 }
 0x548   : > { %1879 = vrcp.f32 %v710_v6 }
 0x54b   : > { %v713_v7 = vpop.xlane.xlu0 %712 }
 0x54c   : > { %1881 = vrcp.f32 %v713_v7 }
 0x54f   : > { %v720_v8 = vpop.permute.xlu0 %719 }
 0x550   : > { %1768 = vmatpush3.bf16.msra.mxu0 %v720_v8 }
 0x551   : > { %1779 = vmatprep.subr.bf16.mxu0 %v1915_v1 }
 0x553   : > { %v867_v22 = vpop.permute.xlu0 %866 }
 0x554   : > { %v872_v26 = vsel %vm523_vm2, %v867_v22, 0 }
 0x555   : > { %v1880_v9 = vpop.eup %1879 }
 0x556   : > { %v716_v12 = vmul.f32 %v1880_v9, %v1876_v63  ;;  %v992_v63 = vsel %vm772_vm4, %v1657_v62, 0 }
 0x557   : > { %v865_v30 = vpop.permute.xlu0 %864 }
 0x559   : > { %v1882_v10 = vpop.eup %1881 }
 0x55a   : > { %v717_v13 = vmul.f32 %v1882_v10, %v1878_v2 }
 0x55c   : > { %v718_v14 = vpack.c.bf16 %v717_v13, %v716_v12 }
 0x55e   : > { %1770 = vmatmul.mubr.msk.bf16.vlgmr.msra.gmra.mxu0 %vm571_vm3, %v718_v14 }
 0x55f   : > { %1780 = vmatpush3.bf16.msra.mxu0 %v821_v17  ;;  %1781 = vmatprep.mubr.msk.bf16.mxu0 %vm1916_vm0, %v1915_v1 }
 0x560   : > { %1791 = vmatprep.subr.bf16.mxu0 %v1915_v1 }
 0x566   : > { %1782 = vmatmul.mubr.msk.bf16.vlgmr.msra.gmra.mxu0 %vm523_vm2, %v642_v49 }
 0x567   : > { %1793 = vmatprep.mubr.msk.bf16.mxu0 %vm1916_vm0, %v1915_v1 }
 0x61e   : > { %v759_v20 = vpop.f32.mrf.mxu0 }
 0x620   : > { %v1771_v21 = vpop.f32.mrf.mxu0 }
 0x622   : > { %v762_v23 = vpop.f32.mrf.mxu0 }
 0x623   : > { %v766_v24 = vpack.c.bf16 %v762_v23, %v759_v20 }
 0x624   : > { %v1772_v25 = vpop.f32.mrf.mxu0 }
 0x625   : > { %1776 = vmatmul.mubr.msk.bf16.vlgmr.msra.gmra.mxu1 %vm523_vm2, %v766_v24 }
 0x626   : > { %1786 = vmatpush3.bf16.xpose.msra.mxu1 %v872_v26  ;;  %v2094_v27 = vpop.f32.mrf.mxu0  ;;  %1787 = vmatprep.mubr.msk.bf16.mxu1 %vm1916_vm0, %v1915_v1 }
 0x627   : > { %1797 = vmatprep.subr.bf16.mxu1 %v1915_v1 }
 0x628   : > { %v1783_v28 = vpop.f32.mrf.mxu0 }
 0x62a   : > { %v2099_v29 = vpop.f32.mrf.mxu0 }
 0x62c   : > { %v1784_v31 = vpop.f32.mrf.mxu0 }
 0x62d   : > { %1788 = vmatmul.mubr.msk.bf16.vlgmr.msra.gmra.mxu1 %vm523_vm2, %v865_v30 }
 0x62e   : > { %1799 = vmatprep.mubr.msk.bf16.mxu1 %vm1916_vm0, %v1915_v1  ;;  %1798 = vmatpush3.bf16.msra.mxu1 %v992_v63 }
 0x62f   : > { %1809 = vmatprep.subr.bf16.mxu1 %v1915_v1 }
 0x6e5   : > { %v2104_v32 = vpop.f32.mrf.mxu1 }
 0x6e6   : > { %v858_v25 = vadd.f32 %v2094_v27, %v2104_v32 }
 0x6e7   : > { %v1777_v33 = vpop.f32.mrf.mxu1 }
 0x6e9   : > { %v2106_v34 = vpop.f32.mrf.mxu1 }
 0x6ea   : > { %v861_v31 = vadd.f32 %v2099_v29, %v2106_v34  ;;  %v1661_v29 = vld [vmem:[%s2252_s3 + $0xc] sm:$0xf] }
 0x6eb   : > { %v1778_v35 = vpop.f32.mrf.mxu1  ;;  %v1165_v32 = vsel %vm772_vm4, %v1661_v29, 0  ;;  %v1863_v29 = vld [vmem:[%s2258_s9 + $0x48] sm:$0xff]  }
 0x6ed   : > { %v908_v36 = vpop.f32.mrf.mxu1 }
 0x6ee   : > { %v915_v37 = vsel %vm571_vm3, %v908_v36, -inf }
 0x6ef   : > { %916 = vmax.xlane.f32.xlu1 %v915_v37  ;;  %v1789_v38 = vpop.f32.mrf.mxu1 }
 0x6f1   : > { %v911_v39 = vpop.f32.mrf.mxu1 }
 0x6f2   : > { %v918_v40 = vsel %vm571_vm3, %v911_v39, -inf }
 0x6f3   : > { %919 = vmax.xlane.f32.xlu0 %v918_v40  ;;  %v1790_v41 = vpop.f32.mrf.mxu1 }
 0x700   : > { %938 = vrot.lane.b32.xlu1 %v2041_v15, %s1924_s18 }
 0x778   : > { %v917_v42 = vpop.xlane.xlu1 %916 }
 0x779   : > { %v921_v43 = vsub.f32 %v908_v36, %v917_v42 }
 0x77b   : > { %v923_v44 = vmul.f32 1.442695, %v921_v43 }
 0x77c   : > { %v939_v45 = vpop.permute.xlu1 %938  ;;  %v920_v46 = vpop.xlane.xlu0 %919 }
 0x77d   : > { %1883 = vpow2.f32 %v923_v44  ;;  %v922_v47 = vsub.f32 %v911_v39, %v920_v46  ;;  %1792 = vmatpush3.bf16.msra.mxu0 %v939_v45 }
 0x77e   : > { %1803 = vmatprep.subr.bf16.mxu0 %v1915_v1 }
 0x77f   : > { %v925_v48 = vmul.f32 1.442695, %v922_v47 }
 0x781   : > { %1885 = vpow2.f32 %v925_v48  ;;  %v1663_v48 = vld [vmem:[%s2253_s4] ss:$0 sm:$0xff] }
 0x78a   : > { %v1884_v49 = vpop.eup %1883 }
 0x78b   : > { %v927_v50 = vsel %vm571_vm3, %v1884_v49, 0.0 }
 0x78c   : > { %928 = vadd.xlane.f32.xlu1 %v927_v50 }
 0x78e   : > { %v1886_v51 = vpop.eup %1885 }
 0x78f   : > { %v930_v52 = vsel %vm571_vm3, %v1886_v51, 0.0 }
 0x790   : > { %931 = vadd.xlane.f32.xlu1 %v930_v52 }
 0x7a1   : > { %1039 = vrot.lane.b32.xlu1 %v2041_v15, %s1925_s19 }
 0x7a5   : > { %1037 = vrot.lane.b32.xlu1 %v2043_v16, %s1926_s20 }
 0x815   : > { %v929_v53 = vpop.xlane.xlu1 %928 }
 0x816   : > { %1887 = vrcp.f32 %v929_v53 }
 0x819   : > { %v932_v54 = vpop.xlane.xlu1 %931 }
 0x81a   : > { %1889 = vrcp.f32 %v932_v54 }
 0x81d   : > { %v1040_v59 = vpop.permute.xlu1 %1039 }
 0x81e   : > { %v1045_v61 = vsel %vm523_vm2, %v1040_v59, 0 }
 0x821   : > { %v1038_v16 = vpop.permute.xlu1 %1037 }
 0x823   : > { %v1888_v55 = vpop.eup %1887 }
 0x824   : > { %v935_v57 = vmul.f32 %v1888_v55, %v1884_v49 }
 0x827   : > { %v1890_v56 = vpop.eup %1889 }
 0x828   : > { %v936_v58 = vmul.f32 %v1890_v56, %v1886_v51 }
 0x82a   : > { %v937_v60 = vpack.c.bf16 %v936_v58, %v935_v57 }
 0x82c   : > { %1794 = vmatmul.mubr.msk.bf16.vlgmr.msra.gmra.mxu0 %vm571_vm3, %v937_v60 }
 0x82d   : > { %1804 = vmatpush3.bf16.xpose.msra.mxu0 %v1045_v61  ;;  %1805 = vmatprep.mubr.msk.bf16.mxu0 %vm1916_vm0, %v1915_v1 }
 0x82e   : > { %1815 = vmatprep.subr.bf16.mxu0 %v1915_v1 }
 0x834   : > { %1806 = vmatmul.mubr.msk.bf16.vlgmr.msra.gmra.mxu0 %vm523_vm2, %v1038_v16 }
 0x835   : > { %1817 = vmatprep.mubr.msk.bf16.mxu0 %vm1916_vm0, %v1915_v1  ;;  %1816 = vmatpush3.bf16.msra.mxu0 %v1165_v32  ;;  %v1864_v32 = vld [vmem:[%s2258_s9 + $0x8] sm:$0xff]  }
 0x8ec   : > { %v978_v0 = vpop.f32.mrf.mxu0 }
 0x8ee   : > { %v1795_v2 = vpop.f32.mrf.mxu0 }
 0x8f0   : > { %v981_v5 = vpop.f32.mrf.mxu0 }
 0x8f1   : > { %v985_v6 = vpack.c.bf16 %v981_v5, %v978_v0 }
 0x8f2   : > { %v1796_v7 = vpop.f32.mrf.mxu0 }
 0x8f3   : > { %1800 = vmatmul.mubr.msk.bf16.vlgmr.msra.gmra.mxu1 %vm523_vm2, %v985_v6  ;;  %v1845_v7 = vld [vmem:[%s2256_s7 + $0x10] ss:$8 sps:$4 sm:$0xff]  }
 0x8f4   : > { %v1081_v8 = vpop.f32.mrf.mxu0  ;;  %1811 = vmatprep.mubr.msk.bf16.mxu1 %vm1916_vm0, %v1915_v1 }
 0x8f5   : > { %v1088_v9 = vsel %vm571_vm3, %v1081_v8, -inf }
 0x8f6   : > { %1089 = vmax.xlane.f32.xlu0 %v1088_v9  ;;  %v1807_v10 = vpop.f32.mrf.mxu0  ;;  %v1848_v9 = vld [vmem:[%s2256_s7] ss:$8 sps:$4 sm:$0xff]  }
 0x8f7   : > { %v1928_v10 = vmov 0  }
 0x8f8   : > { %v1084_v11 = vpop.f32.mrf.mxu0 }
 0x8f9   : > { %v1091_v12 = vsel %vm571_vm3, %v1084_v11, -inf }
 0x8fa   : > { %1092 = vmax.xlane.f32.xlu1 %v1091_v12  ;;  %v1808_v13 = vpop.f32.mrf.mxu0  ;;  %v1852_v12 = vld [vmem:[%s2258_s9 + $0x38] sm:$0xff]  }
 0x8fb   : > { %v1853_v13 = vld [vmem:[%s2258_s9 + $0x70] sm:$0xff]  }
 0x97f   : > { %v1090_v14 = vpop.xlane.xlu0 %1089 }
 0x980   : > { %v1094_v17 = vsub.f32 %v1081_v8, %v1090_v14  ;;  %v1850_v8 = vld [vmem:[%s2256_s7 + $0x4] ss:$8 sps:$4 sm:$0xff]   ;;  %v1854_v14 = vld [vmem:[%s2258_s9 + $0x30] sm:$0xff]  }
 0x982   : > { %v1096_v18 = vmul.f32 1.442695, %v1094_v17  ;;  %v1855_v17 = vld [vmem:[%s2258_s9 + $0x68] sm:$0xff]  }
 0x983   : > { %v1093_v19 = vpop.xlane.xlu1 %1092 }
 0x984   : > { %1891 = vpow2.f32 %v1096_v18  ;;  %v1095_v20 = vsub.f32 %v1084_v11, %v1093_v19  ;;  %v1851_v11 = vld [vmem:[%s2258_s9 + $0x78] sm:$0xff]   ;;  %v1856_v18 = vld [vmem:[%s2258_s9 + $0x28] sm:$0xff]   ;;  %v1857_v19 = vld [vmem:[%s2258_s9 + $0x60] sm:$0xff]  }
 0x985   : > { %1719 = vmatprep.subr.bf16.mxu0 %v1851_v11 }
 0x986   : > { %v1098_v21 = vmul.f32 1.442695, %v1095_v20  ;;  %v1858_v20 = vld [vmem:[%s2258_s9 + $0x20] sm:$0xff]  }
 0x988   : > { %1893 = vpow2.f32 %v1098_v21  ;;  %v1859_v21 = vld [vmem:[%s2258_s9 + $0x58] sm:$0xff]  }
 0x991   : > { %v1892_v22 = vpop.eup %1891 }
 0x992   : > { %v1100_v1 = vsel %vm571_vm3, %v1892_v22, 0.0 }
 0x993   : > { %1101 = vadd.xlane.f32.xlu0 %v1100_v1 }
 0x995   : > { %v1894_v23 = vpop.eup %1893 }
 0x996   : > { %v1103_v24 = vsel %vm571_vm3, %v1894_v23, 0.0 }
 0x997   : > { %1104 = vadd.xlane.f32.xlu0 %v1103_v24 }
 0x9ad   : > { %1111 = vrot.lane.b32.xlu0 %v2041_v15, %s1927_s23 }
 0x9b3   : > { %v1028_v26 = vpop.f32.mrf.mxu1 }
 0x9b4   : > { %v1035_v28 = vadd.f32 %v1028_v26, %v858_v25 }
 0x9b5   : > { %v1801_v30 = vpop.f32.mrf.mxu1 }
 0x9b7   : > { %v1031_v33 = vpop.f32.mrf.mxu1 }
 0x9b8   : > { %v1036_v35 = vadd.f32 %v1031_v33, %v861_v31  ;;  %v1664_v33 = vld [vmem:[%s2254_s5] ss:$0 sm:$0xff] }
 0x9b9   : > { %v1802_v36 = vpop.f32.mrf.mxu1 }
 0xa1c   : > { %v1102_v37 = vpop.xlane.xlu0 %1101 }
 0xa1d   : > { %1895 = vrcp.f32 %v1102_v37 }
 0xa20   : > { %v1105_v38 = vpop.xlane.xlu0 %1104 }
 0xa21   : > { %1897 = vrcp.f32 %v1105_v38  ;;  %v1665_v38 = vld [vmem:[%s2255_s6] ss:$0 sm:$0xff] }
 0xa24   : > { %v1112_v39 = vpop.permute.xlu0 %1111 }
 0xa25   : > { %1810 = vmatpush3.bf16.msra.mxu1 %v1112_v39 }
 0xa2a   : > { %v1896_v40 = vpop.eup %1895 }
 0xa2b   : > { %v1108_v41 = vmul.f32 %v1896_v40, %v1892_v22  ;;  %v1860_v22 = vld [vmem:[%s2258_s9 + $0x18] sm:$0xff]  }
 0xa2e   : > { %v1898_v15 = vpop.eup %1897 }
 0xa2f   : > { %v1109_v42 = vmul.f32 %v1898_v15, %v1894_v23 }
 0xa31   : > { %v1110_v27 = vpack.c.bf16 %v1109_v42, %v1108_v41  ;;  %v1861_v42 = vld [vmem:[%s2258_s9 + $0x50] sm:$0xff]  }
 0xa33   : > { %1812 = vmatmul.mubr.msk.bf16.vlgmr.msra.gmra.mxu1 %vm571_vm3, %v1110_v27  ;;  %v1862_v27 = vld [vmem:[%s2258_s9 + $0x10] sm:$0xff]  }
 0xa34   : > { %1338 = vmatprep.mubr.bf16.mxu1 %v1928_v10 }
 0xaf3   : > { %v1151_v34 = vpop.f32.mrf.mxu1 }
 0xaf5   : > { %v1813_v43 = vpop.f32.mrf.mxu1 }
 0xaf6   : > { %v1866_v43 = vld [vmem:[%s2258_s9] sm:$0xff]  }
 0xaf7   : > { %v1154_v44 = vpop.f32.mrf.mxu1 }
 0xaf8   : > { %v1158_v45 = vpack.c.bf16 %v1154_v44, %v1151_v34  ;;  %v1865_v34 = vld [vmem:[%s2258_s9 + $0x40] sm:$0xff]   ;;  %v1273_v44 = vlaneseq }
 0xaf9   : > { %v1814_v46 = vpop.f32.mrf.mxu1 }
 0xafa   : > { %1818 = vmatmul.mubr.msk.bf16.vlgmr.msra.gmra.mxu0 %vm523_vm2, %v1158_v45  ;;  %v1274_v45 = vshrl.u32 %v1273_v44, 7 }
 0xafb   : > { %1720 = vmatpush3.bf16.msra.mxu0 %v1852_v12 }
 0xafc   : > { %1721 = vmatprep.subr.bf16.mxu0 %v1853_v13  ;;  %v1279_v46 = vsub.s32 1, %v1274_v45 }
 0xaff   : > { %1722 = vmatpush3.bf16.msra.mxu0 %v1854_v14 }
 0xb00   : > { %1723 = vmatprep.subr.bf16.mxu0 %v1855_v17 }
 0xb03   : > { %1724 = vmatpush3.bf16.msra.mxu0 %v1856_v18 }
 0xb04   : > { %1725 = vmatprep.subr.bf16.mxu0 %v1857_v19 }
 0xb07   : > { %1726 = vmatpush3.bf16.msra.mxu0 %v1858_v20 }
 0xb08   : > { %1727 = vmatprep.subr.bf16.mxu0 %v1859_v21 }
 0xb0b   : > { %1728 = vmatpush3.bf16.msra.mxu0 %v1860_v22 }
 0xb0c   : > { %1729 = vmatprep.subr.bf16.mxu0 %v1861_v42 }
 0xb0f   : > { %1730 = vmatpush3.bf16.msra.mxu0 %v1862_v27 }
 0xb10   : > { %1731 = vmatprep.subr.bf16.mxu0 %v1863_v29 }
 0xb13   : > { %1732 = vmatpush3.bf16.msra.mxu0 %v1864_v32 }
 0xb14   : > { %1733 = vmatprep.subr.bf16.mxu0 %v1865_v34 }
 0xb17   : > { %1734 = vmatpush3.bf16.msra.mxu0 %v1866_v43 }
 0xbba   : > { %v1201_v47 = vpop.f32.mrf.mxu0 }
 0xbbb   : > { %v1208_v49 = vadd.f32 %v1201_v47, %v1035_v28  ;;  %v1275_v47 = vsub.s32 0, %v1274_v45 }
 0xbbc   : > { %v1819_v50 = vpop.f32.mrf.mxu0 }
 0xbbd   : > { %v1217_v51 = vadd.f32 %v1663_v48, %v1208_v49 }
 0xbbe   : > { %v1204_v52 = vpop.f32.mrf.mxu0 }
 0xbbf   : > { %v1209_v53 = vadd.f32 %v1204_v52, %v1036_v35  ;;  %v1219_v54 = vadd.f32 %v1217_v51, %v2029_v3 }
 0xbc0   : > { %v1820_v55 = vpop.f32.mrf.mxu0 }
 0xbc1   : > { %v1218_v56 = vadd.f32 %v1663_v48, %v1209_v53  ;;  %v1223_v57 = vsel %vm471_vm1, %v1219_v54, 0.0  ;;  %v1271_v48 = vld [vmem:[%s2257_s8] sm:$0x3] }
 0xbc2   : > { %1224 = vadd.xlane.f32.xlu0 %v1223_v57  ;;  %v1280_v50 = vrot.slane %v1271_v48, %v1279_v46  ;;  %v1276_v51 = vrot.slane %v1271_v48, %v1275_v47 }
 0xbc3   : > { %v1220_v58 = vadd.f32 %v1218_v56, %v2031_v4  ;;  %v1847_v4 = vld [vmem:[%s2256_s7 + $0x14] ss:$8 sps:$4 sm:$0xff]  }
 0xbc4   : > { %1318 = vmatprep.subr.bf16.mxu1 %v1847_v4 }
 0xbc5   : > { %v1226_v59 = vsel %vm471_vm1, %v1220_v58, 0.0  ;;  %1319 = vmatpush1.bf16.msra.mxu1 %v1845_v7 }
 0xbc6   : > { %1227 = vadd.xlane.f32.xlu1 %v1226_v59  ;;  %1320 = vmatprep.subr.bf16.mxu1 %v1850_v8 }
 0xbc9   : > { %1321 = vmatpush1.bf16.msra.mxu1 %v1848_v9 }
 0xc4b   : > { %v1225_v60 = vpop.xlane.xlu0 %1224 }
 0xc4c   : > { %v1230_v61 = vmul.f32 0.03125, %v1225_v60 }
 0xc4e   : > { %v1232_v16 = vsub.f32 %v1219_v54, %v1230_v61 }
 0xc4f   : > { %v1228_v62 = vpop.xlane.xlu1 %1227 }
 0xc50   : > { %v1231_v63 = vmul.f32 0.03125, %v1228_v62  ;;  %v1234_v0 = vmul.f32 %v1232_v16, %v1232_v16 }
 0xc52   : > { %v1233_v2 = vsub.f32 %v1220_v58, %v1231_v63  ;;  %v1236_v5 = vsel %vm471_vm1, %v1234_v0, 0.0 }
 0xc53   : > { %1237 = vadd.xlane.f32.xlu1 %v1236_v5 }
 0xc54   : > { %v1235_v3 = vmul.f32 %v1233_v2, %v1233_v2 }
 0xc56   : > { %v1239_v6 = vsel %vm471_vm1, %v1235_v3, 0.0 }
 0xc57   : > { %1240 = vadd.xlane.f32.xlu1 %v1239_v6 }
 0xcdc   : > { %v1238_v1 = vpop.xlane.xlu1 %1237 }
 0xcdd   : > { %v1242_v23 = vmul.f32 0.03125, %v1238_v1 }
 0xcdf   : > { %v1244_v24 = vadd.f32 1e-05, %v1242_v23 }
 0xce0   : > { %v1241_v25 = vpop.xlane.xlu1 %1240 }
 0xce1   : > { %1899 = vrsqrt.f32 %v1244_v24  ;;  %v1243_v26 = vmul.f32 0.03125, %v1241_v25 }
 0xce3   : > { %v1245_v28 = vadd.f32 1e-05, %v1243_v26 }
 0xce5   : > { %1901 = vrsqrt.f32 %v1245_v28 }
 0xcee   : > { %v1900_v30 = vpop.eup %1899 }
 0xcef   : > { %v1248_v31 = vmul.f32 %v1900_v30, %v1232_v16 }
 0xcf1   : > { %v1256_v37 = vmul.f32 %v1664_v33, %v1248_v31 }
 0xcf2   : > { %v1902_v35 = vpop.eup %1901 }
 0xcf3   : > { %v1249_v36 = vmul.f32 %v1902_v35, %v1233_v2  ;;  %v1264_v40 = vadd.f32 %v1665_v38, %v1256_v37  ;;  %v1671_v2 = vld [vmem:[%s2259_s10] ss:$0 sm:$0xff] }
 0xcf5   : > { %v1257_v39 = vmul.f32 %v1664_v33, %v1249_v36  ;;  %v1688_v36 = vld [vmem:[%s2260_s11] ss:$0 sm:$0xff] }
 0xcf7   : > { %v1265_v15 = vadd.f32 %v1665_v38, %v1257_v39  ;;  %v1689_v38 = vld [vmem:[%s2261_s12] ss:$0 sm:$0xff] }
 0xcf9   : > { %v1266_v41 = vpack.c.bf16 %v1265_v15, %v1264_v40 }
 0xcfb   : > { %1670 = vmatmul.mubr.msk.bf16.vlgmr.msra.gmra.mxu1 %vm471_vm1, %v1266_v41 }
 0xdbb   : > { %v1340_v49 = vpop.f32.mrf.mxu1 }
 0xdbc   : > { %v1341_v56 = vadd.f32 %v1340_v49, %v1276_v51 }
 0xdbd   : > { %v1342_v52 = vpop.f32.mrf.mxu1 }
 0xdbe   : > { %v1343_v54 = vadd.f32 %v1342_v52, %v1280_v50  ;;  %v1349_v16 = vmax.f32 %v1341_v56, 0.0 }
 0xdbf   : > { %v1344_v53 = vpop.f32.mrf.mxu1 }
 0xdc0   : > { %v1345_v55 = vadd.f32 %v1344_v53, %v1276_v51  ;;  %v1350_v60 = vmax.f32 %v1343_v54, 0.0 }
 0xdc1   : > { %v1346_v57 = vpop.f32.mrf.mxu1 }
 0xdc2   : > { %v1347_v58 = vadd.f32 %v1346_v57, %v1280_v50  ;;  %v1351_v59 = vmax.f32 %v1345_v55, 0.0 }
 0xdc4   : > { %v1352_v61 = vmax.f32 %v1347_v58, 0.0  ;;  %v1353_v63 = vpack.c.bf16 %v1351_v59, %v1349_v16 }
 0xdc6   : > { %v1354_v62 = vpack.c.bf16 %v1352_v61, %v1350_v60 }
 0xdc8   : > { %1522 = vmatprep.mubr.bf16.mxu0 %v1354_v62 }
 0xdc9   : > { %1523 = vmatmul.mubr.bf16.vlgmr.msra.gmra.mxu0 %v1353_v63 }
 0xe89   : > { %v1735_v0 = vpop.f32.mrf.mxu0 }
 0xe8b   : > { %v1736_v5 = vpop.f32.mrf.mxu0 }
 0xe8c   : > { %v1737_v3 = vadd.f32 %v1736_v5, %v1735_v0 }
 0xe8d   : > { %v1738_v6 = vpop.f32.mrf.mxu0 }
 0xe8e   : > { %v1525_v4 = vadd.f32 %v1737_v3, %v1671_v2 }
 0xe8f   : > { %v1739_v7 = vpop.f32.mrf.mxu0 }
 0xe90   : > { %v1740_v8 = vadd.f32 %v1739_v7, %v1738_v6  ;;  %v1531_v9 = vadd.f32 %v1525_v4, %v1264_v40 }
 0xe92   : > { %v1528_v10 = vadd.f32 %v1740_v8, %v1671_v2  ;;  %v1535_v11 = vsel %vm471_vm1, %v1531_v9, 0.0 }
 0xe93   : > { %1536 = vadd.xlane.f32.xlu1 %v1535_v11 }
 0xe94   : > { %v1532_v12 = vadd.f32 %v1528_v10, %v1265_v15 }
 0xe96   : > { %v1538_v13 = vsel %vm471_vm1, %v1532_v12, 0.0 }
 0xe97   : > { %1539 = vadd.xlane.f32.xlu1 %v1538_v13 }
 0xf1c   : > { %v1537_v14 = vpop.xlane.xlu1 %1536 }
 0xf1d   : > { %v1541_v17 = vmul.f32 0.03125, %v1537_v14 }
 0xf1f   : > { %v1543_v18 = vsub.f32 %v1531_v9, %v1541_v17 }
 0xf20   : > { %v1540_v19 = vpop.xlane.xlu1 %1539 }
 0xf21   : > { %v1542_v20 = vmul.f32 0.03125, %v1540_v19  ;;  %v1545_v21 = vmul.f32 %v1543_v18, %v1543_v18 }
 0xf23   : > { %v1544_v22 = vsub.f32 %v1532_v12, %v1542_v20  ;;  %v1547_v1 = vsel %vm471_vm1, %v1545_v21, 0.0 }
 0xf24   : > { %1548 = vadd.xlane.f32.xlu1 %v1547_v1 }
 0xf25   : > { %v1546_v23 = vmul.f32 %v1544_v22, %v1544_v22 }
 0xf27   : > { %v1550_v24 = vsel %vm471_vm1, %v1546_v23, 0.0 }
 0xf28   : > { %1551 = vadd.xlane.f32.xlu1 %v1550_v24 }
 0xfad   : > { %v1549_v25 = vpop.xlane.xlu1 %1548 }
 0xfae   : > { %v1553_v26 = vmul.f32 0.03125, %v1549_v25 }
 0xfb0   : > { %v1555_v28 = vadd.f32 1e-05, %v1553_v26 }
 0xfb1   : > { %v1552_v30 = vpop.xlane.xlu1 %1551 }
 0xfb2   : > { %1903 = vrsqrt.f32 %v1555_v28  ;;  %v1554_v31 = vmul.f32 0.03125, %v1552_v30 }
 0xfb4   : > { %v1556_v33 = vadd.f32 1e-05, %v1554_v31 }
 0xfb6   : > { %1905 = vrsqrt.f32 %v1556_v33 }
 0xfbf   : > { %v1904_v35 = vpop.eup %1903 }
 0xfc0   : > { %v1559_v37 = vmul.f32 %v1904_v35, %v1543_v18 }
 0xfc2   : > { %v1567_v39 = vmul.f32 %v1688_v36, %v1559_v37 }
 0xfc3   : > { %v1906_v40 = vpop.eup %1905 }
 0xfc4   : > { %v1575_v15 = vadd.f32 %v1689_v38, %v1567_v39  ;;  %v1560_v41 = vmul.f32 %v1906_v40, %v1544_v22 }
 0xfc6   : > { %1577 = vst.msk [vmem:[%s442_s27] sm:$0xff] %vm471_vm1, %v1575_v15  ;;  %v1568_v42 = vmul.f32 %v1688_v36, %v1560_v41 }
 0xfc8   : > { %v1576_v27 = vadd.f32 %v1689_v38, %v1568_v42 }
 0xfca   : > { %1578 = vst.msk [vmem:[%s442_s27 + $0x8] sm:$0xff] %vm471_vm1, %v1576_v27 }
 0xfcb PF: > { %s23_s25 = sadd.s32 1, %s1913_s25  }
 0xfcc   : > { %p20_p4 = scmp.ge.s32.totalorder %s23_s25, 6  }
 0xfce   :  { %22 = sbr.rel (!%p20_p4) target bundleno = 1 (0x1), region = 105 }

</bundles_post_ra>
